<compile_context>
chip_gen: v7x
topology: tpu7x:2x2x1
jax: 0.10.0
libtpu: 0.0.40
codegen_flags: <defaults>
</compile_context>

<pallas_src>
import jax
import jax.numpy as jnp
from jax.experimental import pallas as pl
from jax.experimental.pallas import tpu as pltpu


def _round_up(n: int, m: int) -> int:
    return (n + m - 1) // m * m


def bert_adapter_kernel(x_ref, w1_ref, b1_ref, w2_ref, b2_ref, out_ref):
    """One row-tile of the fused adapter: fc1 -> ReLU -> fc2 -> ReLU -> +x."""
    x = x_ref[...]                                                     # [TM, Dp]
    # fc1 on the MXU with f32 accumulation; bias + ReLU in f32 on the VPU.
    h = jnp.dot(x, w1_ref[...], preferred_element_type=jnp.float32)   # [TM, Ip]
    h = jnp.maximum(h + b1_ref[...], 0.0)
    # fc2: cast the intermediate back to the MXU operand dtype (no-op for f32).
    h = jnp.dot(h.astype(w2_ref.dtype), w2_ref[...],
                preferred_element_type=jnp.float32)                   # [TM, Dp]
    h = jnp.maximum(h + b2_ref[...], 0.0)
    # Residual add in f32, single lane-dense store.
    out_ref[...] = (x.astype(jnp.float32) + h).astype(out_ref.dtype)


def prepare_adapter_params(w1, b1, w2, b2, matmul_dtype=jnp.float32):
    """Once-per-parameter-set prep (hoisted out of the per-call path):
    transpose weights to [in, out] and zero-pad D and I to multiples of 128."""
    I, D = w1.shape                        # torch layout: fc1.weight is [I, D]
    Dp, Ip = _round_up(D, 128), _round_up(I, 128)
    w1_t = jnp.zeros((Dp, Ip), matmul_dtype).at[:D, :I].set(w1.T.astype(matmul_dtype))
    w2_t = jnp.zeros((Ip, Dp), matmul_dtype).at[:I, :D].set(w2.T.astype(matmul_dtype))
    # Biases stay f32: elementwise work is done in f32 regardless of MXU dtype.
    b1_r = jnp.zeros((1, Ip), jnp.float32).at[:, :I].set(b1.astype(jnp.float32))
    b2_r = jnp.zeros((1, Dp), jnp.float32).at[:, :D].set(b2.astype(jnp.float32))
    return dict(w1_t=w1_t, b1=b1_r, w2_t=w2_t, b2=b2_r,
                D=D, I=I, Dp=Dp, Ip=Ip, matmul_dtype=matmul_dtype)


def bert_adapter(x, params, *, tm=512):
    """x: [..., D] -> [..., D].  `params` comes from prepare_adapter_params."""
    orig_shape, orig_dtype = x.shape, x.dtype
    D, Dp, Ip = params["D"], params["Dp"], params["Ip"]
    assert orig_shape[-1] == D
    mm_dtype = params["matmul_dtype"]

    x2d = x.reshape(-1, D)
    M = x2d.shape[0]
    # Row tile: multiple of 8 (sublanes), capped at `tm` (per-tile VMEM budget).
    TM = min(tm, _round_up(M, 8))
    Mp = _round_up(M, TM)

    if (Mp, Dp) == (M, D) and x2d.dtype == mm_dtype:
        x_p = x2d
    else:
        x_p = jnp.zeros((Mp, Dp), mm_dtype).at[:M, :D].set(x2d.astype(mm_dtype))

    grid = (Mp // TM,)

    cost = pl.CostEstimate(
        flops=4 * Mp * Dp * Ip,            # two matmuls, 2*M*K*N each
        transcendentals=0,
        bytes_accessed=(x_p.size * x_p.dtype.itemsize
                        + Mp * Dp * jnp.dtype(orig_dtype).itemsize
                        + params["w1_t"].size * params["w1_t"].dtype.itemsize
                        + params["w2_t"].size * params["w2_t"].dtype.itemsize
                        + (params["b1"].size + params["b2"].size) * 4),
    )

    out = pl.pallas_call(
        bert_adapter_kernel,
        out_shape=jax.ShapeDtypeStruct((Mp, Dp), orig_dtype),
        grid_spec=pltpu.PrefetchScalarGridSpec(
            num_scalar_prefetch=0,
            grid=grid,
            in_specs=[
                # Activations: tiled over rows -> auto double-buffered pipeline.
                pl.BlockSpec((TM, Dp), lambda i: (i, 0)),
                # Weights/biases: constant index_map -> VMEM-resident across all
                # row tiles (pipeline elides redundant re-copies).  They are small
                # enough that the default double buffer is immaterial here; could
                # use pipeline_mode=pl.Buffered(1) to reclaim it on tight VMEM.
                pl.BlockSpec((Dp, Ip), lambda i: (0, 0)),
                pl.BlockSpec((1, Ip), lambda i: (0, 0)),
                pl.BlockSpec((Ip, Dp), lambda i: (0, 0)),
                pl.BlockSpec((1, Dp), lambda i: (0, 0)),
            ],
            out_specs=pl.BlockSpec((TM, Dp), lambda i: (i, 0)),
        ),
        compiler_params=pltpu.CompilerParams(
            # Row tiles are independent: lets v7x shard them across its 2 TCs.
            dimension_semantics=("parallel",)),
        cost_estimate=cost,
    )(x_p, params["w1_t"], params["b1"], params["w2_t"], params["b2"])

    return out[:M, :D].reshape(orig_shape)


def xavier_normal(key, shape, gain):
    # torch xavier_normal_: std = gain * sqrt(2 / (fan_in + fan_out)),
    # weight shape is [out_features, in_features].
    fan_out, fan_in = shape
    std = gain * jnp.sqrt(2.0 / (fan_in + fan_out))
    return std * jax.random.normal(key, shape, dtype=jnp.float32)


def adapter_reference(x, w1, b1, w2, b2):
    h = jnp.maximum(x @ w1.T + b1, 0.0)
    h = jnp.maximum(h @ w2.T + b2, 0.0)
    return x + h


if __name__ == "__main__":
    input_size, intermediate_size = 32, 16
    key = jax.random.PRNGKey(0)
    kx, kx2, k1, k2 = jax.random.split(key, 4)

    relu_gain = float(jnp.sqrt(2.0))  # nn.init.calculate_gain('relu')
    w1 = xavier_normal(k1, (intermediate_size, input_size), relu_gain)  # fc1.weight [I, D]
    b1 = jnp.zeros((intermediate_size,), jnp.float32)                   # fc1.bias
    w2 = xavier_normal(k2, (input_size, intermediate_size), relu_gain)  # fc2.weight [D, I]
    b2 = jnp.zeros((input_size,), jnp.float32)                          # fc2.bias

    # ---------------- f32 MXU operands (tight check) ----------------
    params_f32 = prepare_adapter_params(w1, b1, w2, b2, matmul_dtype=jnp.float32)

    x = jax.random.normal(kx, (2, 8, input_size), dtype=jnp.float32)    # [B, S, D]
    out = jax.block_until_ready(bert_adapter(x, params_f32))
    ref = adapter_reference(x, w1, b1, w2, b2)
    assert out.shape == x.shape
    assert jnp.allclose(out, ref, atol=1e-5, rtol=1e-5)

    # Ragged row count: exercises multi-tile grid + row padding
    # (M = 3*37 = 111 rows -> 2 tiles of TM=64, padded to 128 rows).
    x_big = jax.random.normal(kx2, (3, 37, input_size), dtype=jnp.float32)
    out_big = jax.block_until_ready(bert_adapter(x_big, params_f32, tm=64))
    ref_big = adapter_reference(x_big, w1, b1, w2, b2)
    assert out_big.shape == x_big.shape
    assert jnp.allclose(out_big, ref_big, atol=1e-5, rtol=1e-5)

    # -------- bf16 MXU operands, f32 accumulation (loose check) --------
    params_bf16 = prepare_adapter_params(w1, b1, w2, b2, matmul_dtype=jnp.bfloat16)
    out_bf16 = jax.block_until_ready(bert_adapter(x, params_bf16))
    assert out_bf16.shape == x.shape and out_bf16.dtype == x.dtype
    assert jnp.allclose(out_bf16, ref, atol=1e-1, rtol=1e-1)

    print("KERNEL_OK")
</pallas_src>

<mosaic_0001>
module attributes {stable_mosaic.version = 11 : i64} {
  func.func @bert_adapter_kernel(%arg0: i32, %arg1: memref<16x128xf32, #tpu.memory_space<vmem>>, %arg2: memref<128x128xf32, #tpu.memory_space<vmem>>, %arg3: memref<1x128xf32, #tpu.memory_space<vmem>>, %arg4: memref<128x128xf32, #tpu.memory_space<vmem>>, %arg5: memref<1x128xf32, #tpu.memory_space<vmem>>, %arg6: memref<16x128xf32, #tpu.memory_space<vmem>>) attributes {dimension_semantics = [#tpu.dimension_semantics<parallel>], iteration_bounds = array<i64: 1>, scalar_prefetch = 0 : i64, scratch_operands = 0 : i64, tpu.core_type = #tpu.core_type<tc>, window_params = [{transform_indices = @transform_0, window_bounds = array<i64: 16, 128>}, {pipeline_mode = #tpu.pipeline_mode<synchronous>, transform_indices = @transform_1, window_bounds = array<i64: 128, 128>}, {pipeline_mode = #tpu.pipeline_mode<synchronous>, transform_indices = @transform_2, window_bounds = array<i64: 1, 128>}, {pipeline_mode = #tpu.pipeline_mode<synchronous>, transform_indices = @transform_3, window_bounds = array<i64: 128, 128>}, {pipeline_mode = #tpu.pipeline_mode<synchronous>, transform_indices = @transform_4, window_bounds = array<i64: 1, 128>}, {transform_indices = @transform_5, window_bounds = array<i64: 16, 128>}]} {
    %c0 = arith.constant 0 : index
    %c0_0 = arith.constant 0 : index
    %0 = vector.load %arg1[%c0, %c0_0] : memref<16x128xf32, #tpu.memory_space<vmem>>, vector<16x128xf32>
    %c0_1 = arith.constant 0 : index
    %c0_2 = arith.constant 0 : index
    %1 = vector.load %arg2[%c0_1, %c0_2] : memref<128x128xf32, #tpu.memory_space<vmem>>, vector<128x128xf32>
    %cst = arith.constant dense<0.000000e+00> : vector<16x128xf32>
    %2 = tpu.matmul %0, %1, %cst {dimension_numbers = #tpu.dot_dimension_numbers<[1], [0], [0], [1], [0, 0, 1, 1], [], []>} : vector<16x128xf32>, vector<128x128xf32>, vector<16x128xf32> -> vector<16x128xf32>
    %c0_3 = arith.constant 0 : index
    %c0_4 = arith.constant 0 : index
    %3 = vector.load %arg3[%c0_3, %c0_4] : memref<1x128xf32, #tpu.memory_space<vmem>>, vector<1x128xf32>
    %4 = vector.broadcast %3 : vector<1x128xf32> to vector<16x128xf32>
    %5 = arith.addf %2, %4 : vector<16x128xf32>
    %cst_5 = arith.constant 0.000000e+00 : f32
    %6 = vector.broadcast %cst_5 : f32 to vector<16x128xf32>
    %7 = arith.maximumf %5, %6 : vector<16x128xf32>
    %c0_6 = arith.constant 0 : index
    %c0_7 = arith.constant 0 : index
    %8 = vector.load %arg4[%c0_6, %c0_7] : memref<128x128xf32, #tpu.memory_space<vmem>>, vector<128x128xf32>
    %cst_8 = arith.constant dense<0.000000e+00> : vector<16x128xf32>
    %9 = tpu.matmul %7, %8, %cst_8 {dimension_numbers = #tpu.dot_dimension_numbers<[1], [0], [0], [1], [0, 0, 1, 1], [], []>} : vector<16x128xf32>, vector<128x128xf32>, vector<16x128xf32> -> vector<16x128xf32>
    %c0_9 = arith.constant 0 : index
    %c0_10 = arith.constant 0 : index
    %10 = vector.load %arg5[%c0_9, %c0_10] : memref<1x128xf32, #tpu.memory_space<vmem>>, vector<1x128xf32>
    %11 = vector.broadcast %10 : vector<1x128xf32> to vector<16x128xf32>
    %12 = arith.addf %9, %11 : vector<16x128xf32>
    %cst_11 = arith.constant 0.000000e+00 : f32
    %13 = vector.broadcast %cst_11 : f32 to vector<16x128xf32>
    %14 = arith.maximumf %12, %13 : vector<16x128xf32>
    %15 = arith.addf %0, %14 : vector<16x128xf32>
    %c0_12 = arith.constant 0 : index
    %c0_13 = arith.constant 0 : index
    %16 = vector.load %arg6[%c0_12, %c0_13] : memref<16x128xf32, #tpu.memory_space<vmem>>, vector<16x128xf32>
    tpu.vector_store %arg6[%c0_12, %c0_13], %15 {strides = array<i32>} : memref<16x128xf32, #tpu.memory_space<vmem>>, vector<16x128xf32>,
    return
  }
  func.func @transform_0(%arg0: i32) -> (i32, i32) {
    %c0_i32 = arith.constant 0 : i32
    %c0_i32_0 = arith.constant 0 : i32
    return %arg0, %c0_i32 : i32, i32
  }
  func.func @transform_1(%arg0: i32) -> (i32, i32) {
    %c0_i32 = arith.constant 0 : i32
    %c0_i32_0 = arith.constant 0 : i32
    %c0_i32_1 = arith.constant 0 : i32
    return %c0_i32, %c0_i32_0 : i32, i32
  }
  func.func @transform_2(%arg0: i32) -> (i32, i32) {
    %c0_i32 = arith.constant 0 : i32
    %c0_i32_0 = arith.constant 0 : i32
    %c0_i32_1 = arith.constant 0 : i32
    return %c0_i32, %c0_i32_0 : i32, i32
  }
  func.func @transform_3(%arg0: i32) -> (i32, i32) {
    %c0_i32 = arith.constant 0 : i32
    %c0_i32_0 = arith.constant 0 : i32
    %c0_i32_1 = arith.constant 0 : i32
    return %c0_i32, %c0_i32_0 : i32, i32
  }
  func.func @transform_4(%arg0: i32) -> (i32, i32) {
    %c0_i32 = arith.constant 0 : i32
    %c0_i32_0 = arith.constant 0 : i32
    %c0_i32_1 = arith.constant 0 : i32
    return %c0_i32, %c0_i32_0 : i32, i32
  }
  func.func @transform_5(%arg0: i32) -> (i32, i32) {
    %c0_i32 = arith.constant 0 : i32
    %c0_i32_0 = arith.constant 0 : i32
    return %arg0, %c0_i32 : i32, i32
  }
}

</mosaic_0001>

<bundles_post_ra>
// kernel: tpu_custom_call.1
= control target key start
LH: loop header
LB: loop body
LE: loop exit
PB: predicated region body
PF: predicated region fallthrough
CT: control target
= control target key end

     0   :  { %10 = vsyncpa [#allocation3], 0  ;;  %s671_s0 = inlined_call_operand.hbm [shape: f32[16,128], index: 0, kind: input, shape index: {}]   ;;  %s672_s1 = inlined_call_operand.hbm [shape: f32[128,128], index: 1, kind: input, shape index: {}]   ;;  %s673_s2 = inlined_call_operand.vmem [shape: f32[1,128], index: 2, kind: input, shape index: {}]   ;;  %s674_s3 = inlined_call_operand.hbm [shape: f32[128,128], index: 3, kind: input, shape index: {}]   ;;  %s675_s4 = inlined_call_operand.vmem [shape: f32[1,128], index: 4, kind: input, shape index: {}]   ;;  %s676_s5 = inlined_call_operand.hbm [shape: f32[16,128], index: 5, kind: output, shape index: {}]  }
   0x1   :  { %11 = vsyncpa [#allocation6], 0 }
   0x2   :  { %12 = vsyncpa [#allocation4], 0  ;;  %s558_s18 = smov [#allocation5]   ;;  %s559_s20 = smov [#allocation2]  }
   0x3   :  { %s30_s19 = sshll.u32 %s558_s18, 4  ;;  %s18_s21 = sshll.u32 %s559_s20, 4  ;;  %s31_s19 = int_to_ptr.vmem [resolvable:$true] %s30_s19  ;;  %s594_s21 = int_to_ptr.vmem [resolvable:$true] %s18_s21 }
   0x4   :  { %s464_s24 = scalar_lea.hbm %s672_s1, 2048 }
   0x5   :  { %p465_p0 = scmp.ne.s32.totalorder %s672_s1, %s464_s24  ;;  %p468_p1 = scmp.lt.u32.totalorder %s464_s24, %s672_s1 }
   0x7   :  { %p470_p2 = pnand %p468_p1, %p465_p0 }
   0x9   :  { %473 = shalt.err (!%p470_p2)
}
   0xa   :  { %s474_s29 = scalar_lea.vmem %s31_s19, 2048  ;;  %p479_p4 = scmp.lt.s32.totalorder %s31_s19, %s31_s19 }
   0xb   :  { %p475_p3 = scmp.ne.s32.totalorder %s31_s19, %s474_s29  ;;  %p480_p5 = scmp.lt.s32.totalorder %s474_s29, %s474_s29 }
   0xd   :  { %p481_p6 = por %p480_p5, %p479_p4 }
   0xf   :  { %p482_p7 = pnand %p481_p6, %p475_p3 }
  0x11   :  { %485 = shalt.err (!%p482_p7)
}
  0x12   :  { %s560_s30 = smov 128   ;;  %s561_s6 = smov 8  }
  0x13   :  { %36 = dma.hbm_to_vmem [thread:$0]  %s672_s1, 2048, %s31_s19, [#allocation6], %s560_s30, %s560_s30, %s561_s6  }
  0x14   :  { %s486_s11 = scalar_lea.hbm %s671_s0, 256 }
  0x15   :  { %p487_p8 = scmp.ne.s32.totalorder %s671_s0, %s486_s11  ;;  %p490_p9 = scmp.lt.u32.totalorder %s486_s11, %s671_s0 }
  0x17   :  { %p492_p10 = pnand %p490_p9, %p487_p8 }
  0x19   :  { %495 = shalt.err (!%p492_p10)
}
  0x1a   :  { %s496_s16 = scalar_lea.vmem %s594_s21, 256  ;;  %p501_p12 = scmp.lt.s32.totalorder %s594_s21, %s594_s21 }
  0x1b   :  { %p497_p11 = scmp.ne.s32.totalorder %s594_s21, %s496_s16  ;;  %p502_p13 = scmp.lt.s32.totalorder %s496_s16, %s496_s16 }
  0x1d   :  { %p503_p0 = por %p502_p13, %p501_p12 }
  0x1f   :  { %p504_p1 = pnand %p503_p0, %p497_p11 }
  0x21   :  { %507 = shalt.err (!%p504_p1)
}
  0x22   :  { %24 = dma.hbm_to_vmem [thread:$0]  %s671_s0, 256, %s594_s21, [#allocation3], %s560_s30, %s560_s30, %s561_s6  }
  0x23   :  { %s562_s18 = smov [#allocation7]   ;;  %s508_s23 = scalar_lea.hbm %s674_s3, 2048 }
  0x24   :  { %s44_s19 = sshll.u32 %s562_s18, 4  ;;  %p509_p2 = scmp.ne.s32.totalorder %s674_s3, %s508_s23  ;;  %s45_s19 = int_to_ptr.vmem [resolvable:$true] %s44_s19 }
  0x25   :  { %p512_p3 = scmp.lt.u32.totalorder %s508_s23, %s674_s3 }
  0x27   :  { %p514_p4 = pnand %p512_p3, %p509_p2 }
  0x29   :  { %517 = shalt.err (!%p514_p4)
}
  0x2a   :  { %s518_s28 = scalar_lea.vmem %s45_s19, 2048  ;;  %p523_p6 = scmp.lt.s32.totalorder %s45_s19, %s45_s19 }
  0x2b   :  { %p519_p5 = scmp.ne.s32.totalorder %s45_s19, %s518_s28  ;;  %p524_p7 = scmp.lt.s32.totalorder %s518_s28, %s518_s28 }
  0x2d   :  { %p525_p8 = por %p524_p7, %p523_p6 }
  0x2f   :  { %p526_p9 = pnand %p525_p8, %p519_p5 }
  0x31   :  { %529 = shalt.err (!%p526_p9)
}
  0x32   :  { %50 = dma.hbm_to_vmem [thread:$0]  %s674_s3, 2048, %s45_s19, [#allocation6], %s560_s30, %s560_s30, %s561_s6  }
  0x33   :  { %552 = dma.done.wait [#allocation3], 256  }
  0x34   :  { %553 = vsyncadd [#allocation3], 4294967040 }
  0x35   :  { %554 = dma.done.wait [#allocation6], 4096  }
  0x36   :  { %555 = vsyncadd [#allocation6], 4294963200  ;;  %v64_v0 = vld [vmem:[#allocation5] sm:$0xff]  ;;  %v65_v1 = vld [vmem:[#allocation5 + $0x8] sm:$0xff]  ;;  %s563_s9 = smov [#allocation8]  }
  0x37   :  { %v66_v2 = vld [vmem:[#allocation5 + $0x10] sm:$0xff]  ;;  %v394_v3 = vpack.c.bf16 %v65_v1, %v64_v0  ;;  %v67_v4 = vld [vmem:[#allocation5 + $0x18] sm:$0xff]  ;;  %v68_v6 = vld [vmem:[#allocation5 + $0x20] sm:$0xff]  ;;  %s273_s10 = sshll.u32 %s563_s9, 4  ;;  %s274_s10 = int_to_ptr.vmem [resolvable:$true] %s273_s10 }
  0x38   :  { %v398_v5 = vpack.c.bf16 %v67_v4, %v66_v2  ;;  %v69_v7 = vld [vmem:[#allocation5 + $0x28] sm:$0xff]  ;;  %v70_v9 = vld [vmem:[#allocation5 + $0x30] sm:$0xff]  ;;  %v71_v10 = vld [vmem:[#allocation5 + $0x38] sm:$0xff]  ;;  %p535_p11 = scmp.lt.s32.totalorder %s274_s10, %s274_s10 }
  0x39   :  { %395 = vmatprep.subr.bf16.mxu0 %v394_v3  ;;  %v402_v8 = vpack.c.bf16 %v69_v7, %v68_v6  ;;  %v646_v11 = vld [vmem:[#allocation2] sm:$0xff]  ;;  %v164_v12 = vld [vmem:[#allocation7] sm:$0xff]  ;;  %v165_v13 = vld [vmem:[#allocation7 + $0x8] sm:$0xff]  ;;  %v406_v20 = vpack.c.bf16 %v71_v10, %v70_v9 }
  0x3a   :  { %397 = vmatpush3.bf16.msra.mxu0 %v394_v3  ;;  %356 = vmatprep.mubr.f32.mxu0 %v646_v11  ;;  %v166_v14 = vld [vmem:[#allocation7 + $0x10] sm:$0xff]  ;;  %v426_v15 = vpack.c.bf16 %v165_v13, %v164_v12  ;;  %v167_v16 = vld [vmem:[#allocation7 + $0x18] sm:$0xff]  ;;  %v168_v18 = vld [vmem:[#allocation7 + $0x20] sm:$0xff] }
  0x3b   :  { %399 = vmatprep.subr.bf16.mxu0 %v398_v5  ;;  %v430_v17 = vpack.c.bf16 %v167_v16, %v166_v14  ;;  %v169_v19 = vld [vmem:[#allocation7 + $0x28] sm:$0xff]  ;;  %v72_v21 = vld [vmem:[#allocation5 + $0x40] sm:$0xff]  ;;  %v170_v24 = vld [vmem:[#allocation7 + $0x30] sm:$0xff] }
  0x3c   :  { %427 = vmatprep.subr.bf16.mxu1 %v426_v15  ;;  %v73_v22 = vld [vmem:[#allocation5 + $0x48] sm:$0xff]  ;;  %v434_v23 = vpack.c.bf16 %v169_v19, %v168_v18  ;;  %v171_v25 = vld [vmem:[#allocation7 + $0x38] sm:$0xff]  ;;  %v74_v27 = vld [vmem:[#allocation5 + $0x50] sm:$0xff] }
  0x3d   :  { %429 = vmatpush3.bf16.msra.mxu1 %v426_v15  ;;  %v410_v26 = vpack.c.bf16 %v73_v22, %v72_v21  ;;  %v75_v28 = vld [vmem:[#allocation5 + $0x58] sm:$0xff]  ;;  %v438_v29 = vpack.c.bf16 %v171_v25, %v170_v24  ;;  %v172_v30 = vld [vmem:[#allocation7 + $0x40] sm:$0xff]  ;;  %v173_v31 = vld [vmem:[#allocation7 + $0x48] sm:$0xff] }
  0x3e   :  { %401 = vmatpush3.bf16.msra.mxu0 %v398_v5  ;;  %431 = vmatprep.subr.bf16.mxu1 %v430_v17  ;;  %v414_v32 = vpack.c.bf16 %v75_v28, %v74_v27  ;;  %v76_v33 = vld [vmem:[#allocation5 + $0x60] sm:$0xff]  ;;  %v77_v34 = vld [vmem:[#allocation5 + $0x68] sm:$0xff]  ;;  %v442_v35 = vpack.c.bf16 %v173_v31, %v172_v30  ;;  %v174_v36 = vld [vmem:[#allocation7 + $0x50] sm:$0xff] }
  0x3f   :  { %403 = vmatprep.subr.bf16.mxu0 %v402_v8  ;;  %v175_v37 = vld [vmem:[#allocation7 + $0x58] sm:$0xff]  ;;  %v418_v38 = vpack.c.bf16 %v77_v34, %v76_v33  ;;  %v78_v39 = vld [vmem:[#allocation5 + $0x70] sm:$0xff]  ;;  %v176_v42 = vld [vmem:[#allocation7 + $0x60] sm:$0xff] }
  0x40   :  { %v79_v40 = vld [vmem:[#allocation5 + $0x78] sm:$0xff]  ;;  %v446_v41 = vpack.c.bf16 %v175_v37, %v174_v36  ;;  %v177_v43 = vld [vmem:[#allocation7 + $0x68] sm:$0xff]  ;;  %v178_v47 = vld [vmem:[#allocation7 + $0x70] sm:$0xff] }
  0x41   :  { %433 = vmatpush3.bf16.msra.mxu1 %v430_v17  ;;  %v422_v44 = vpack.c.bf16 %v79_v40, %v78_v39  ;;  %v450_v45 = vpack.c.bf16 %v177_v43, %v176_v42  ;;  %v63_v46 = vld [vmem:[#allocation2 + $0x8] sm:$0xff]  ;;  %v286_v50 = vld [vmem:[%s673_s2] ss:$0 sm:$0xff]  ;;  %s530_s2 = scalar_lea.vmem %s274_s10, 256 }
  0x42   :  { %405 = vmatpush3.bf16.msra.mxu0 %v402_v8  ;;  %435 = vmatprep.subr.bf16.mxu1 %v434_v23  ;;  %v179_v48 = vld [vmem:[#allocation7 + $0x78] sm:$0xff]  ;;  %v287_v57 = vld [vmem:[%s675_s4] ss:$0 sm:$0xff]  ;;  %p531_p10 = scmp.ne.s32.totalorder %s274_s10, %s530_s2  ;;  %p536_p12 = scmp.lt.s32.totalorder %s530_s2, %s530_s2 }
  0x43   :  { %407 = vmatprep.subr.bf16.mxu0 %v406_v20  ;;  %v454_v49 = vpack.c.bf16 %v179_v48, %v178_v47 }
  0x44   :  { %p537_p13 = por %p536_p12, %p535_p11 }
  0x45   :  { %437 = vmatpush3.bf16.msra.mxu1 %v434_v23 }
  0x46   :  { %409 = vmatpush3.bf16.msra.mxu0 %v406_v20  ;;  %439 = vmatprep.subr.bf16.mxu1 %v438_v29  ;;  %p538_p0 = pnand %p537_p13, %p531_p10 }
  0x47   :  { %411 = vmatprep.subr.bf16.mxu0 %v410_v26 }
  0x49   :  { %441 = vmatpush3.bf16.msra.mxu1 %v438_v29 }
  0x4a   :  { %413 = vmatpush3.bf16.msra.mxu0 %v410_v26  ;;  %443 = vmatprep.subr.bf16.mxu1 %v442_v35 }
  0x4b   :  { %415 = vmatprep.subr.bf16.mxu0 %v414_v32 }
  0x4d   :  { %445 = vmatpush3.bf16.msra.mxu1 %v442_v35 }
  0x4e   :  { %417 = vmatpush3.bf16.msra.mxu0 %v414_v32  ;;  %447 = vmatprep.subr.bf16.mxu1 %v446_v41 }
  0x4f   :  { %419 = vmatprep.subr.bf16.mxu0 %v418_v38 }
  0x51   :  { %449 = vmatpush3.bf16.msra.mxu1 %v446_v41 }
  0x52   :  { %421 = vmatpush3.bf16.msra.mxu0 %v418_v38  ;;  %451 = vmatprep.subr.bf16.mxu1 %v450_v45 }
  0x53   :  { %423 = vmatprep.subr.bf16.mxu0 %v422_v44 }
  0x55   :  { %453 = vmatpush3.bf16.msra.mxu1 %v450_v45 }
  0x56   :  { %425 = vmatpush3.bf16.msra.mxu0 %v422_v44  ;;  %455 = vmatprep.subr.bf16.mxu1 %v454_v49 }
  0x59   :  { %357 = vmatmul.mubr.f32.vlgmr.msra.gmra.mrb[0].mxu0 %v63_v46  ;;  %457 = vmatpush3.bf16.msra.mxu1 %v454_v49 }
 0x12c   :  { %v358_v51 = vpop.f32.mrb[0].mxu0 }
 0x12d   :  { %v159_v52 = vadd.f32 %v358_v51, %v286_v50  ;;  %v153_v53 = vpop.f32.mrb[1].mxu0 }
 0x12e   :  { %v154_v54 = vadd.f32 %v286_v50, %v153_v53 }
 0x12f   :  { %v163_v56 = vmax.f32 %v159_v52, 0.0 }
 0x130   :  { %v162_v55 = vmax.f32 %v154_v54, 0.0 }
 0x132   :  { %391 = vmatprep.mubr.f32.mxu1 %v162_v55 }
 0x133   :  { %392 = vmatmul.mubr.f32.vlgmr.msra.gmra.mrb[0].mxu1 %v163_v56 }
 0x206   :  { %v393_v58 = vpop.f32.mrb[0].mxu1 }
 0x207   :  { %v259_v59 = vadd.f32 %v393_v58, %v287_v57  ;;  %v253_v60 = vpop.f32.mrb[1].mxu1 }
 0x208   :  { %v254_v61 = vadd.f32 %v287_v57, %v253_v60 }
 0x209   :  { %v263_v62 = vmax.f32 %v259_v59, 0.0 }
 0x20a   :  { %v262_v63 = vmax.f32 %v254_v61, 0.0 }
 0x20b   :  { %v265_v0 = vadd.f32 %v263_v62, %v63_v46 }
 0x20c   :  { %v264_v1 = vadd.f32 %v262_v63, %v646_v11 }
 0x20d   :  { %267 = vst [vmem:[#allocation8 + $0x8] sm:$0xff] %v265_v0 }
 0x20e   :  { %266 = vst [vmem:[#allocation8] sm:$0xff] %v264_v1 }
 0x20f   :  { %541 = shalt.err (!%p538_p0)
}
 0x210   :  { %s542_s12 = scalar_lea.hbm %s676_s5, 256 }
 0x211   :  { %p543_p1 = scmp.ne.s32.totalorder %s676_s5, %s542_s12  ;;  %p546_p2 = scmp.lt.u32.totalorder %s542_s12, %s676_s5 }
 0x213   :  { %p548_p3 = pnand %p546_p2, %p543_p1 }
 0x215   :  { %551 = shalt.err (!%p548_p3)
}
 0x216   :  { %279 = dma.vmem_to_hbm [thread:$0]  %s274_s10, 256, %s676_s5, [#allocation4], %s560_s30, %s560_s30, %s561_s6  }
 0x217   :  { %556 = dma.done.wait [#allocation4], 256  }
 0x218   :  { %557 = vsyncadd [#allocation4], 4294967040 }
 0x219   :  { %283 = vsyncpa [#allocation3], 1 }
 0x21a   :  { %284 = vsyncpa [#allocation6], 1 }
 0x21b   :  { %285 = vsyncpa [#allocation4], 1 }

</bundles_post_ra>
